<compile_context>
chip_gen: v7x
topology: tpu7x:2x2x1
jax: 0.10.0
libtpu: 0.0.40
codegen_flags: <defaults>
</compile_context>

<pallas_src>
import functools

import jax
import jax.numpy as jnp
from jax.experimental import pallas as pl
from jax.experimental.pallas import tpu as pltpu


def _apply_activation(y, activation):
    if activation is None:
        return y
    if activation == "relu":
        return jnp.maximum(y, 0.0)
    if activation == "gelu":
        # PyTorch F.gelu default is the exact erf form.
        return jax.nn.gelu(y, approximate=False)
    if activation == "sigmoid":
        return jax.nn.sigmoid(y)
    if activation == "tanh":
        return jnp.tanh(y)
    if activation == "silu":
        return jax.nn.silu(y)
    raise ValueError(f"unsupported activation: {activation}")


def _temporal_linear_kernel(x_ref, w_ref, b_ref, o_ref, *, activation, precision):
    # x_ref: (L_in, TC)  w_ref: (L_out, L_in)  b_ref: (L_out, 1)  o_ref: (L_out, TC)
    y = jnp.dot(w_ref[...], x_ref[...],
                preferred_element_type=jnp.float32, precision=precision)
    y = y + b_ref[...]                       # f32 bias add, broadcast over lanes
    y = _apply_activation(y, activation)     # f32 activation (VPU/EUP)
    # TODO(synk): training-mode dropout (p>0) not implemented; eval mode (identity).
    o_ref[...] = y.astype(o_ref.dtype)


def _pick_lane_tile(total, per_lane_bytes, budget_bytes, block_limit):
    """Largest multiple-of-128 divisor of `total` that fits budget & block limit."""
    best = None
    d = 128
    while d <= total:
        if total % d == 0 and d <= block_limit and d * per_lane_bytes <= budget_bytes:
            best = d
        d += 128
    return best


def temporal_linear(x, weight, bias, *, activation=None, block_n=8192,
                    compute_dtype=jnp.bfloat16,
                    vmem_budget_bytes=32 * 1024 * 1024):
    """x: (B, L_in, C), weight: (L_out, L_in), bias: (L_out,) -> (B, L_out, C).

    Eval-mode forward of TSMixer's TemporalLinear (dropout is identity).
    `block_n` is a soft cap on the lane tile; keep it large (>=512) — 128-lane
    tiles are per-step-overhead dominated.
    """
    B, L_in, C = x.shape
    L_out = weight.shape[0]
    out_dtype = x.dtype

    cdt = x.dtype if compute_dtype is None else compute_dtype
    x_c = x.astype(cdt)
    w_c = weight.astype(cdt)
    bias2d = bias.reshape(L_out, 1).astype(jnp.float32)

    precision = jax.lax.Precision.HIGHEST if cdt == jnp.float32 else None
    kernel = functools.partial(_temporal_linear_kernel,
                               activation=activation, precision=precision)

    in_bytes = jnp.dtype(cdt).itemsize
    out_bytes = jnp.dtype(out_dtype).itemsize
    # Per lane column: double-buffered x tile + double-buffered out tile.
    per_lane = 2 * (L_in * in_bytes + L_out * out_bytes)
    # Resident weight + bias (counted double-buffered, conservatively).
    fixed = 2 * (L_out * L_in * in_bytes + L_out * 4)
    budget = max(vmem_budget_bytes - fixed, 128 * per_lane)

    if C % 128 == 0:
        # ---- Native-layout path: no wrapper transposes. ----
        tc = _pick_lane_tile(C, per_lane, budget, block_n) or 128
        # v7x has 2 TensorCores: keep the parallel grid at >= 2 steps.
        if B * (C // tc) < 2 and tc == C and C % 256 == 0:
            tc = C // 2
        grid = (B, C // tc)
        footprint = fixed + per_lane * tc
        vmem_limit = int(max(32 << 20, min(footprint + (4 << 20), 112 << 20)))
        return pl.pallas_call(
            kernel,
            out_shape=jax.ShapeDtypeStruct((B, L_out, C), out_dtype),
            grid_spec=pltpu.PrefetchScalarGridSpec(
                num_scalar_prefetch=0,
                grid=grid,
                in_specs=[
                    pl.BlockSpec((None, L_in, tc), lambda b, j: (b, 0, j)),  # x tile
                    pl.BlockSpec((L_out, L_in), lambda b, j: (0, 0)),        # weight
                    pl.BlockSpec((L_out, 1), lambda b, j: (0, 0)),           # bias
                ],
                out_specs=pl.BlockSpec((None, L_out, tc), lambda b, j: (b, 0, j)),
            ),
            compiler_params=pltpu.CompilerParams(
                dimension_semantics=("parallel", "parallel"),
                vmem_limit_bytes=vmem_limit,
            ),
        )(x_c, w_c, bias2d)

    # ---- Fallback path (C not a multiple of 128): lane-dense padded slab. ----
    total = B * C
    pad_total = pl.cdiv(total, 128) * 128
    x2 = jnp.transpose(x_c, (1, 0, 2)).reshape(L_in, total)
    if pad_total != total:
        x2 = jnp.pad(x2, ((0, 0), (0, pad_total - total)))
    tn = _pick_lane_tile(pad_total, per_lane, budget, block_n) or 128
    if (pad_total // tn) < 2 and tn == pad_total and pad_total % 256 == 0:
        tn = pad_total // 2
    grid = (pad_total // tn,)
    footprint = fixed + per_lane * tn
    vmem_limit = int(max(32 << 20, min(footprint + (4 << 20), 112 << 20)))
    y2 = pl.pallas_call(
        kernel,
        out_shape=jax.ShapeDtypeStruct((L_out, pad_total), out_dtype),
        grid_spec=pltpu.PrefetchScalarGridSpec(
            num_scalar_prefetch=0,
            grid=grid,
            in_specs=[
                pl.BlockSpec((L_in, tn), lambda i: (0, i)),      # x slab tile
                pl.BlockSpec((L_out, L_in), lambda i: (0, 0)),   # weight (resident)
                pl.BlockSpec((L_out, 1), lambda i: (0, 0)),      # bias   (resident)
            ],
            out_specs=pl.BlockSpec((L_out, tn), lambda i: (0, i)),
        ),
        compiler_params=pltpu.CompilerParams(
            dimension_semantics=("parallel",),
            vmem_limit_bytes=vmem_limit,
        ),
    )(x2, w_c, bias2d)
    y2 = y2[:, :total]
    return jnp.transpose(y2.reshape(L_out, B, C), (1, 0, 2))


if __name__ == "__main__":
    # Small shapes consistent with the module: batch=2, input_len=8,
    # output_len=16, channels=128 (native-layout path, 2-step parallel grid).
    B, L_in, L_out, C = 2, 8, 16, 128

    key = jax.random.PRNGKey(0)
    kx, kw, kb = jax.random.split(key, 3)

    x = jax.random.normal(kx, (B, L_in, C), dtype=jnp.float32)
    # nn.Linear(input_len, output_len) init: U(-1/sqrt(in), 1/sqrt(in))
    bound = 1.0 / (L_in ** 0.5)
    weight = jax.random.uniform(kw, (L_out, L_in), jnp.float32, -bound, bound)
    bias = jax.random.uniform(kb, (L_out,), jnp.float32, -bound, bound)

    # Main path: bf16 inputs, f32 accumulation + activation, f32 output.
    y = temporal_linear(x, weight, bias, activation="relu")
    y = jax.block_until_ready(y)
    assert y.shape == (B, L_out, C)
    assert y.dtype == x.dtype

    # Reference with identical bf16 input rounding + f32 accumulation.
    xb = x.astype(jnp.bfloat16).astype(jnp.float32)
    wb = weight.astype(jnp.bfloat16).astype(jnp.float32)
    y_ref = jnp.einsum("ot,btc->boc", wb, xb) + bias[None, :, None]
    y_ref = jnp.maximum(y_ref, 0.0)
    assert jnp.allclose(y, y_ref, atol=1e-4, rtol=1e-4), "mismatch vs bf16 reference"

    # Full-f32 PyTorch-parity check (tolerance reflects bf16 input rounding).
    y_f32 = jnp.einsum("ot,btc->boc", weight, x,
                       precision=jax.lax.Precision.HIGHEST) + bias[None, :, None]
    y_f32 = jnp.maximum(y_f32, 0.0)
    assert jnp.allclose(y, y_f32, atol=5e-2, rtol=5e-2), "mismatch vs f32 reference"

    # Fallback path (C not a multiple of 128), strict f32 compute.
    C2 = 96
    x_odd = jax.random.normal(kx, (B, L_in, C2), dtype=jnp.float32)
    y_odd = temporal_linear(x_odd, weight, bias, activation=None, compute_dtype=None)
    y_odd = jax.block_until_ready(y_odd)
    y_odd_ref = jnp.einsum("ot,btc->boc", weight, x_odd,
                           precision=jax.lax.Precision.HIGHEST) + bias[None, :, None]
    assert y_odd.shape == (B, L_out, C2)
    assert jnp.allclose(y_odd, y_odd_ref, atol=1e-5, rtol=1e-5), "mismatch vs fallback ref"

    print("KERNEL_OK")
</pallas_src>

<mosaic_0001>
module attributes {stable_mosaic.version = 11 : i64} {
  func.func @_temporal_linear_kernel(%arg0: i32, %arg1: i32, %arg2: memref<1x8x128xbf16, #tpu.memory_space<vmem>>, %arg3: memref<16x8xbf16, #tpu.memory_space<vmem>>, %arg4: memref<16x1xf32, #tpu.memory_space<vmem>>, %arg5: memref<1x16x128xf32, #tpu.memory_space<vmem>>) attributes {dimension_semantics = [#tpu.dimension_semantics<parallel>, #tpu.dimension_semantics<parallel>], iteration_bounds = array<i64: 2, 1>, scalar_prefetch = 0 : i64, scratch_operands = 0 : i64, tpu.core_type = #tpu.core_type<tc>, window_params = [{transform_indices = @transform_0, window_bounds = array<i64: 1, 8, 128>}, {pipeline_mode = #tpu.pipeline_mode<synchronous>, transform_indices = @transform_1, window_bounds = array<i64: 16, 8>}, {pipeline_mode = #tpu.pipeline_mode<synchronous>, transform_indices = @transform_2, window_bounds = array<i64: 16, 1>}, {transform_indices = @transform_3, window_bounds = array<i64: 1, 16, 128>}]} {
    %c0 = arith.constant 0 : index
    %c0_0 = arith.constant 0 : index
    %0 = vector.load %arg3[%c0, %c0_0] : memref<16x8xbf16, #tpu.memory_space<vmem>>, vector<16x8xbf16>
    %c0_1 = arith.constant 0 : index
    %c0_2 = arith.constant 0 : index
    %c0_3 = arith.constant 0 : index
    %1 = vector.load %arg2[%c0_1, %c0_2, %c0_3] : memref<1x8x128xbf16, #tpu.memory_space<vmem>>, vector<1x8x128xbf16>
    %2 = vector.shape_cast %1 : vector<1x8x128xbf16> to vector<8x128xbf16>
    %cst = arith.constant dense<0.000000e+00> : vector<16x128xf32>
    %3 = tpu.matmul %0, %2, %cst {dimension_numbers = #tpu.dot_dimension_numbers<[1], [0], [0], [1], [0, 0, 1, 1], [], []>} : vector<16x8xbf16>, vector<8x128xbf16>, vector<16x128xf32> -> vector<16x128xf32>
    %c0_4 = arith.constant 0 : index
    %c0_5 = arith.constant 0 : index
    %4 = vector.load %arg4[%c0_4, %c0_5] : memref<16x1xf32, #tpu.memory_space<vmem>>, vector<16x1xf32>
    %5 = vector.broadcast %4 : vector<16x1xf32> to vector<16x128xf32>
    %6 = arith.addf %3, %5 : vector<16x128xf32>
    %cst_6 = arith.constant 0.000000e+00 : f32
    %7 = vector.broadcast %cst_6 : f32 to vector<16x128xf32>
    %8 = arith.maximumf %6, %7 : vector<16x128xf32>
    %c0_7 = arith.constant 0 : index
    %c0_8 = arith.constant 0 : index
    %c0_9 = arith.constant 0 : index
    %9 = vector.load %arg5[%c0_7, %c0_8, %c0_9] : memref<1x16x128xf32, #tpu.memory_space<vmem>>, vector<1x16x128xf32>
    %10 = vector.shape_cast %9 : vector<1x16x128xf32> to vector<16x128xf32>
    %11 = vector.shape_cast %8 : vector<16x128xf32> to vector<1x16x128xf32>
    tpu.vector_store %arg5[%c0_7, %c0_8, %c0_9], %11 {strides = array<i32>} : memref<1x16x128xf32, #tpu.memory_space<vmem>>, vector<1x16x128xf32>,
    return
  }
  func.func @transform_0(%arg0: i32, %arg1: i32) -> (i32, i32, i32) {
    %c0_i32 = arith.constant 0 : i32
    %c0_i32_0 = arith.constant 0 : i32
    return %arg0, %c0_i32, %arg1 : i32, i32, i32
  }
  func.func @transform_1(%arg0: i32, %arg1: i32) -> (i32, i32) {
    %c0_i32 = arith.constant 0 : i32
    %c0_i32_0 = arith.constant 0 : i32
    %c0_i32_1 = arith.constant 0 : i32
    return %c0_i32, %c0_i32_0 : i32, i32
  }
  func.func @transform_2(%arg0: i32, %arg1: i32) -> (i32, i32) {
    %c0_i32 = arith.constant 0 : i32
    %c0_i32_0 = arith.constant 0 : i32
    %c0_i32_1 = arith.constant 0 : i32
    return %c0_i32, %c0_i32_0 : i32, i32
  }
  func.func @transform_3(%arg0: i32, %arg1: i32) -> (i32, i32, i32) {
    %c0_i32 = arith.constant 0 : i32
    %c0_i32_0 = arith.constant 0 : i32
    return %arg0, %c0_i32, %arg1 : i32, i32, i32
  }
}

</mosaic_0001>

<bundles_post_ra>
// kernel: tpu_custom_call.1
= control target key start
LH: loop header
LB: loop body
LE: loop exit
PB: predicated region body
PF: predicated region fallthrough
CT: control target
= control target key end

     0   :  { %8 = vsyncpa [#allocation3], 0  ;;  %s670_s0 = inlined_call_operand.vmem [shape: bf16[2,8,128], index: 0, kind: input, shape index: {}]   ;;  %s671_s1 = inlined_call_operand.vmem [shape: bf16[16,8], index: 1, kind: input, shape index: {}]   ;;  %s672_s2 = inlined_call_operand.vmem [shape: f32[16,1], index: 2, kind: input, shape index: {}]   ;;  %s673_s3 = inlined_call_operand.hbm [shape: f32[2,16,128], index: 3, kind: output, shape index: {}]  }
   0x1   :  { %10 = vsyncpa [#allocation3 + $0x1], 0  ;;  %s546_s12 = smov 0   ;;  %s548_s13 = smov 0  }
   0x2   :  { %s550_s14 = smov 0   ;;  %s552_s15 = smov 0  }
   0x3   :  { %s554_s16 = smov 0   ;;  %s556_s17 = smov 0  }
   0x4 LB: > { %s355_s18 = sadd.s32 4294967295, %s518_s17   ;;  %s356_s19 = sadd.s32 4294967294, %s518_s17   ;;  %s518_s17 = sphi %s556_s17, %s16_s17   ;;  %s514_s16 = sphi %s554_s16, %s680_s16   ;;  %s510_s15 = sphi %s552_s15, %s679_s15   ;;  %s506_s14 = sphi %s550_s14, %s678_s14   ;;  %s502_s13 = sphi %s548_s13, %s677_s13   ;;  %s498_s12 = sphi %s546_s12, %s676_s12  }
   0x5   : > { %s28_s20 = sadd.s32 1, %s514_s16  ;;  %s107_s21 = sadd.s32 1, %s506_s14 }
   0x6   : > { %p30_p0 = scmp.ge.s32.totalorder %s28_s20, 2  ;;  %p117_p1 = scmp.ne.s32.totalorder %s506_s14, %s502_s13 }
   0x7   : > { %p118_p2 = scmp.eq.s32.totalorder %s355_s18, 1  ;;  %p123_p3 = scmp.ne.s32.totalorder %s502_s13, %s498_s12 }
   0x8   : > { %s682_s20 = smov (%p30_p0, %s28_s20), 0  ;;  %p124_p5 = scmp.eq.s32.totalorder %s356_s19, 1 }
   0x9   : > { %p586_p4 = por %p118_p2, %p117_p1  ;;  %s102_s23 = ssub.s32 %s514_s16, %s682_s20 }
   0xa   : > { %p359_p6 = scmp.ge.s32.totalorder %s518_s17, 1  ;;  %p105_p7 = scmp.eq.s32.totalorder %s102_s23, 0 }
   0xb   : > { %p593_p8 = por %p124_p5, %p123_p3  ;;  %p158_p9 = scmp.lt.s32.totalorder %s518_s17, 3 }
   0xc   : > { %s599_s25 = scalar_select %p105_p7, %s506_s14, %s107_s21  }
   0xd   : > { %p159_p10 = pnand %p359_p6, %p158_p9 }
   0xe   : > { %p184_p11 = scmp.lt.s32.totalorder (!%p159_p10), %s510_s15, 1  ;;  %v520_v0 = vmov (!%p159_p10), 0.0   ;;  %vm521_vm0 = vmmov (!%p159_p10), 0   ;;  %v195_v1 = vld [vmem:[%s672_s2] sm:$0xff] (!%p159_p10)  ;;  %v522_v2 = vmov (!%p159_p10), 0   ;;  %vm216_vm1 = vcmask (!%p159_p10), 1043456  }
   0xf   : > { %162 = sbr.rel (%p159_p10) target bundleno = 264 (0x108), region = 32  ;;  %372 = vmatprep.subr.bf16.mxu0 (!%p159_p10), %v520_v0  ;;  %374 = vmatprep.mubr.msk.bf16.mxu0 (!%p159_p10), %vm521_vm0, %v520_v0  ;;  %v196_v3 = vld [vmem:[%s672_s2 + $0x8] sm:$0xff] (!%p159_p10)  ;;  %v439_v6 = vld [vmem:[%s671_s1] sm:$0xff] (!%p159_p10)   ;;  %vm212_vm2 = vcmask (!%p159_p10), 64512   ;;  %s181_s10 = sand.u32 (!%p159_p10), 1, %s502_s13  }
  0x10   : > { %438 = vset.pattern.permute.xlu0 (!%p159_p10), %v522_v2  ;;  %s360_s11 = sshll.u32 (!%p159_p10), %s181_s10, 4  ;;  %s369_s21 = sshll.u32 (!%p159_p10), %s510_s15, 8 }
  0x11   : > { %199 = vperm.xlu0 (!%p159_p10), %438, %v195_v1   ;;  %s183_s18 = scalar_lea.vmem (!%p159_p10), [#allocation2], %s360_s11  ;;  %s622_s27 = scalar_lea.hbm (!%p159_p10), %s673_s3, %s369_s21 }
  0x12   : > { %s280_s19 = sshll.u32 (!%p159_p10), %s183_s18, 4  ;;  %s617_s19 = int_to_ptr.vmem [resolvable:$true] %s280_s19 }
  0x15   : > { %204 = vperm.xlu0 (!%p159_p10), %438, %v196_v3  }
  0x16   : > { %s185_s28 = scalar_select %p184_p11, %s510_s15, 1 }
  0x17   : > { %s440_s15 = scalar_lea.vmem %s617_s19, 256 }
  0x18   : > { %s361_s29 = sshll.u32 %s185_s28, 2  ;;  %s624_s28 = scalar_lea.sflag [#allocation3], %s181_s10 }
  0x19   : > { %s190_s7 = scalar_lea.vmem %s670_s0, %s361_s29  ;;  %p441_p12 = scmp.ne.s32.totalorder %s617_s19, %s440_s15 }
  0x1a   : > { %v194_v4 = vld [vmem:[%s190_s7] sm:$0xf]  ;;  %s523_s29 = smov [#allocation2]  }
  0x1b   : > { %v218_v5 = vsel %vm216_vm1, %v194_v4, 0  ;;  %p442_p13 = pnand %p441_p12, %p586_p4  ;;  %s444_s30 = sshll.u32 %s523_s29, 4  ;;  %s445_s30 = int_to_ptr.vmem [resolvable:$false] %s444_s30 }
  0x1c   : > { %373 = vmatpush3.bf16.msra.mxu0 %v218_v5  ;;  %s446_s4 = scalar_lea.vmem %s445_s30, 512  ;;  %p447_p1 = scmp.lt.s32.totalorder %s617_s19, %s445_s30 }
  0x1d   : > { %p443_p0 = pneg %p442_p13  ;;  %p448_p2 = scmp.lt.s32.totalorder %s446_s4, %s440_s15 }
  0x1f   : > { %375 = vmatmul.mubr.msk.bf16.vlgmr.msra.gmra.mrb[0].mxu0 %vm212_vm2, %v439_v6  ;;  %p449_p3 = por %p448_p2, %p447_p1 }
  0x21   : > { %p450_p5 = pnand %p449_p3, %p443_p0 }
  0x90   : > { %v200_v7 = vpop.permute.xlu0 %199 }
  0x94   : > { %v205_v11 = vpop.permute.xlu0 %204 }
  0xf2   : > { %v254_v8 = vpop.f32.mrb[0].mxu0 }
  0xf3   : > { %v255_v9 = vadd.f32 %v254_v8, %v200_v7  ;;  %v376_v10 = vpop.f32.mrb[1].mxu0 }
  0xf4   : > { %v257_v12 = vpop.f32.mrb[2].mxu0 }
  0xf5   : > { %v261_v13 = vmax.f32 %v255_v9, 0.0  ;;  %v258_v14 = vadd.f32 %v257_v12, %v205_v11  ;;  %v377_v15 = vpop.f32.mrb[3].mxu0 }
  0xf7   : > { %263 = vst [vmem:[%s183_s18] sm:$0xff] %v261_v13  ;;  %v262_v16 = vmax.f32 %v258_v14, 0.0 }
  0xf9   : > { %264 = vst [vmem:[%s183_s18 + $0x8] sm:$0xff] %v262_v16 }
  0xfa   : > { %453 = shalt.err (!%p450_p5)
}
  0xfb   : > { %s454_s5 = scalar_lea.hbm %s622_s27, 256  ;;  %s458_s8 = scalar_lea.hbm %s673_s3, 512 }
  0xfc   : > { %p455_p6 = scmp.ne.s32.totalorder %s622_s27, %s454_s5  ;;  %p459_p10 = scmp.lt.u32.totalorder %s622_s27, %s673_s3 }
  0xfd   : > { %p460_p11 = scmp.lt.u32.totalorder %s458_s8, %s454_s5  ;;  %p462_p13 = scmp.lt.u32.totalorder %s454_s5, %s622_s27 }
  0xfe   : > { %p456_p7 = pnand %p455_p6, %p586_p4 }
  0xff   : > { %p461_p12 = por %p460_p11, %p459_p10 }
 0x100   : > { %p457_p9 = pneg %p456_p7 }
 0x101   : > { %p463_p0 = por %p462_p13, %p461_p12 }
 0x103   : > { %p464_p1 = pnand %p463_p0, %p457_p9 }
 0x105   : > { %467 = shalt.err (!%p464_p1)
}
 0x106   : > { %s524_s11 = smov 128   ;;  %s525_s18 = smov 8  }
 0x107   : > { %378 = dma.vmem_to_hbm [thread:$0]  (%p586_p4), %s617_s19, 256, %s622_s27, %s624_s28, %s524_s11, %s524_s11, %s525_s18  }
 0x108 PF: > { %p384_p2 = scmp.ge.s32.totalorder %s518_s17, 2  ;;  %s295_s21 = sand.u32 1, %s498_s12  }
 0x109   : > { %s296_s23 = scalar_lea.sflag [#allocation3], %s295_s21 }
 0x10a   : > { %p381_p3 = pnand %p384_p2, %p593_p8 }
 0x10c   : > { %493 = dma.done.wait (!%p381_p3), %s296_s23, 256  }
 0x10d   : > { %495 = vsyncadd (!%p381_p3), %s296_s23, 4294967040  ;;  %s16_s17 = sadd.s32 1, %s518_s17   ;;  %s676_s12 = smov %s502_s13 }
 0x10e   : > { %p13_p5 = scmp.ge.s32.totalorder %s16_s17, 4   ;;  %s677_s13 = smov %s506_s14 }
 0x10f   : > { %s678_s14 = smov %s599_s25  ;;  %s679_s15 = smov %s514_s16 }
 0x110   : > { %s680_s16 = smov %s682_s20  ;;  %15 = sbr.rel (!%p13_p5) target bundleno = 4 (0x4), region = 67 }
 0x117   :  { %301 = vsyncpa [#allocation3], 1 }
 0x118   :  { %303 = vsyncpa [#allocation3 + $0x1], 1 }

</bundles_post_ra>
